<compile_context>
chip_gen: v7x
topology: tpu7x:2x2x1
jax: 0.10.0
libtpu: 0.0.40
codegen_flags: <defaults>
</compile_context>

<pallas_src>
import functools

import jax
import jax.numpy as jnp
from jax.experimental import pallas as pl
from jax.experimental.pallas import tpu as pltpu

LANE = 128  # TPU lane width; every feature axis is padded to this


# ----------------------------- Pallas kernel ------------------------------ #

def rainbow_kernel(x_ref, w_ref, b_ref, out_ref, *, action_dim):
    """One batch tile of the Rainbow forward pass.

    x_ref  : [TILE_B, LANE]   bf16  states, zero-padded on the feature axis
    w_ref  : [3, LANE, LANE]  bf16  w[0]=Linear, w[1]=NoisyLinear(folded),
                                    w[2]=fused dueling heads (adv cols | val col)
    b_ref  : [3, LANE]        f32   matching biases (zero-padded)
    out_ref: [TILE_B, LANE]   f32   lane-dense padded output; cols [0, A) hold Q
    """
    cdt = x_ref.dtype
    b = b_ref[...]                                                    # [3, LANE] f32
    x = x_ref[...]                                                    # [TB, LANE]

    # layers[0]: nn.Linear + ReLU  (bf16 MXU inputs, f32 accumulate/epilogue)
    h1 = jnp.dot(x, w_ref[0], preferred_element_type=jnp.float32) + b[0:1, :]
    h1 = jnp.maximum(h1, 0.0).astype(cdt)                             # [TB, H]

    # layers[2]: NoisyLinear (noise pre-folded into W/b) + ReLU
    h2 = jnp.dot(h1, w_ref[1], preferred_element_type=jnp.float32) + b[1:2, :]
    h2 = jnp.maximum(h2, 0.0).astype(cdt)                             # [TB, H]

    # Fused dueling heads: cols [0, A) = advantage, col A = value, rest zero-pad.
    head = jnp.dot(h2, w_ref[2], preferred_element_type=jnp.float32) + b[2:3, :]
    adv = head[:, :action_dim]                                        # [TB, A]
    val = head[:, action_dim:action_dim + 1]                          # [TB, 1]
    # Mean divides by the TRUE action_dim, not the padded lane width.
    adv_mean = jnp.sum(adv, axis=-1, keepdims=True) * (1.0 / action_dim)

    # Lane-dense unmasked store; only cols [0, A) are meaningful (sliced outside).
    out_ref[...] = val + head - adv_mean


# --------------------------------- wrapper --------------------------------- #

def pack_rainbow_params(w1, b1, w2, b2, wa, ba, wv, bv,
                        state_dim, hidden_dim, action_dim,
                        compute_dtype=jnp.bfloat16):
    """Pack all weights into one lane-dense [3, LANE, LANE] slab and all biases
    into one [3, LANE] slab.  Weights arrive in PyTorch [out, in] layout and are
    transposed to [in, out] so the kernel runs plain x @ W matmuls.  The
    advantage and value heads are fused (cols [0, A) = adv, col A = val)."""
    assert hidden_dim == LANE, "demo assumes hidden_dim == 128 (lane-dense)"
    w_slab = jnp.zeros((3, LANE, LANE), jnp.float32)
    b_slab = jnp.zeros((3, LANE), jnp.float32)
    # layers[0]: [S, H] placed in rows [0, S); padded rows stay zero.
    w_slab = w_slab.at[0, :state_dim, :].set(w1.T)
    b_slab = b_slab.at[0, :].set(b1)
    # layers[2] (noisy, pre-folded): [H, H]
    w_slab = w_slab.at[1].set(w2.T)
    b_slab = b_slab.at[1, :].set(b2)
    # fused dueling heads: [H, A+1] padded to [H, LANE]
    w_slab = w_slab.at[2, :, :action_dim].set(wa.T)
    w_slab = w_slab.at[2, :, action_dim:action_dim + 1].set(wv.T)
    b_slab = b_slab.at[2, :action_dim].set(ba)
    b_slab = b_slab.at[2, action_dim].set(bv[0])
    return w_slab.astype(compute_dtype), b_slab


def rainbow_forward_pallas(x, w_slab, b_slab, *, action_dim, tile_b=128,
                           compute_dtype=jnp.bfloat16):
    """x: [B, state_dim] f32.  Returns Q-values [B, action_dim] f32."""
    B, state_dim = x.shape
    assert B % tile_b == 0, "pad the batch to a multiple of tile_b"
    # Zero-pad state features to the lane width and cast to the MXU input dtype.
    x_p = jnp.zeros((B, LANE), compute_dtype).at[:, :state_dim].set(
        x.astype(compute_dtype))

    kernel = functools.partial(rainbow_kernel, action_dim=action_dim)
    out_padded = pl.pallas_call(
        kernel,
        grid=(B // tile_b,),
        in_specs=[
            pl.BlockSpec((tile_b, LANE), lambda i: (i, 0)),      # x: streams
            pl.BlockSpec((3, LANE, LANE), lambda i: (0, 0, 0)),  # weights: resident
            pl.BlockSpec((3, LANE), lambda i: (0, 0)),           # biases: resident
        ],
        out_specs=pl.BlockSpec((tile_b, LANE), lambda i: (i, 0)),
        out_shape=jax.ShapeDtypeStruct((B, LANE), jnp.float32),
        compiler_params=pltpu.CompilerParams(
            dimension_semantics=("parallel",)),   # 2 TCs on v7x; no-op v5e/v6e
    )(x_p, w_slab, b_slab)
    return out_padded[:, :action_dim]


# ------------------------- parameter / noise setup ------------------------- #

def init_linear(key, in_dim, out_dim):
    """PyTorch nn.Linear default init: U(-1/sqrt(in), 1/sqrt(in))."""
    kw, kb = jax.random.split(key)
    bound = in_dim ** (-0.5)
    w = jax.random.uniform(kw, (out_dim, in_dim), jnp.float32, -bound, bound)
    b = jax.random.uniform(kb, (out_dim,), jnp.float32, -bound, bound)
    return w, b


def init_noisy(key, in_dim, out_dim, std):
    """NoisyLinear init from the reference module."""
    kw, kb = jax.random.split(key)
    bound = in_dim ** (-0.5)
    w_mu = jax.random.uniform(kw, (out_dim, in_dim), jnp.float32, -bound, bound)
    b_mu = jax.random.uniform(kb, (out_dim,), jnp.float32, -bound, bound)
    w_sigma = jnp.full((out_dim, in_dim), std * bound, jnp.float32)
    b_sigma = jnp.full((out_dim,), std * bound, jnp.float32)
    return w_mu, w_sigma, b_mu, b_sigma


def fold_noisy(key, w_mu, w_sigma, b_mu, b_sigma):
    """Sample factorized gaussian noise and fold into effective W, b
    (matches NoisyLinear.get_noise + forward)."""
    out_dim, in_dim = w_mu.shape
    kb, kp = jax.random.split(key)
    f = lambda v: jnp.sign(v) * jnp.sqrt(jnp.abs(v))
    b_noise = jax.random.normal(kb, (out_dim,), jnp.float32)
    p_noise = jax.random.normal(kp, (in_dim,), jnp.float32)
    w_noise = jnp.outer(f(b_noise), f(p_noise))
    return w_sigma * w_noise + w_mu, b_sigma * b_noise + b_mu


# --------------------------------- main ------------------------------------ #

if __name__ == "__main__":
    # LunarLander-ish dims; hidden_dim matches args.hidden_dim = 128.
    B, STATE_DIM, HIDDEN_DIM, ACTION_DIM = 256, 8, 128, 4
    STD = 0.5
    TILE_B = 128

    root = jax.random.PRNGKey(0)
    kx, k1, k2, ka, kv, kn2, kna, knv = jax.random.split(root, 8)

    x = jax.random.normal(kx, (B, STATE_DIM), jnp.float32)

    # layers[0]: nn.Linear(state_dim, hidden)
    w1, b1 = init_linear(k1, STATE_DIM, HIDDEN_DIM)
    # layers[2]: NoisyLinear(hidden, hidden)
    w2_eff, b2_eff = fold_noisy(kn2, *init_noisy(k2, HIDDEN_DIM, HIDDEN_DIM, STD))
    # advantage_head: NoisyLinear(hidden, action_dim)
    wa_eff, ba_eff = fold_noisy(kna, *init_noisy(ka, HIDDEN_DIM, ACTION_DIM, STD))
    # value_head: NoisyLinear(hidden, 1)
    wv_eff, bv_eff = fold_noisy(knv, *init_noisy(kv, HIDDEN_DIM, 1, STD))

    w_slab, b_slab = pack_rainbow_params(
        w1, b1, w2_eff, b2_eff, wa_eff, ba_eff, wv_eff, bv_eff,
        STATE_DIM, HIDDEN_DIM, ACTION_DIM)

    out = rainbow_forward_pallas(x, w_slab, b_slab,
                                 action_dim=ACTION_DIM, tile_b=TILE_B)
    out = jax.block_until_ready(out)

    # Reference mirroring the kernel numerics (bf16 MXU inputs, f32 accumulate)
    # using the ORIGINAL unpacked / unpadded / unfused weights.
    bf = jnp.bfloat16
    h1_r = jnp.maximum(jnp.dot(x.astype(bf), w1.T.astype(bf),
                               preferred_element_type=jnp.float32) + b1, 0.0)
    h2_r = jnp.maximum(jnp.dot(h1_r.astype(bf), w2_eff.T.astype(bf),
                               preferred_element_type=jnp.float32) + b2_eff, 0.0)
    adv_r = jnp.dot(h2_r.astype(bf), wa_eff.T.astype(bf),
                    preferred_element_type=jnp.float32) + ba_eff
    val_r = jnp.dot(h2_r.astype(bf), wv_eff.T.astype(bf),
                    preferred_element_type=jnp.float32) + bv_eff
    ref = val_r + adv_r - jnp.mean(adv_r, axis=-1, keepdims=True)

    assert out.shape == (B, ACTION_DIM)
    assert jnp.allclose(out, ref, atol=2e-3, rtol=2e-3), "mismatch vs JAX reference"

    print("KERNEL_OK")
</pallas_src>

<mosaic_0001>
module attributes {stable_mosaic.version = 11 : i64} {
  func.func @rainbow_kernel(%arg0: i32, %arg1: memref<128x128xbf16, #tpu.memory_space<vmem>>, %arg2: memref<3x128x128xbf16, #tpu.memory_space<vmem>>, %arg3: memref<3x128xf32, #tpu.memory_space<vmem>>, %arg4: memref<128x128xf32, #tpu.memory_space<vmem>>) attributes {dimension_semantics = [#tpu.dimension_semantics<parallel>], iteration_bounds = array<i64: 2>, scalar_prefetch = 0 : i64, scratch_operands = 0 : i64, tpu.core_type = #tpu.core_type<tc>, window_params = [{transform_indices = @transform_0, window_bounds = array<i64: 128, 128>}, {pipeline_mode = #tpu.pipeline_mode<synchronous>, transform_indices = @transform_1, window_bounds = array<i64: 3, 128, 128>}, {pipeline_mode = #tpu.pipeline_mode<synchronous>, transform_indices = @transform_2, window_bounds = array<i64: 3, 128>}, {transform_indices = @transform_3, window_bounds = array<i64: 128, 128>}]} {
    %c0 = arith.constant 0 : index
    %c0_0 = arith.constant 0 : index
    %0 = vector.load %arg3[%c0, %c0_0] : memref<3x128xf32, #tpu.memory_space<vmem>>, vector<3x128xf32>
    %c0_1 = arith.constant 0 : index
    %c0_2 = arith.constant 0 : index
    %1 = vector.load %arg1[%c0_1, %c0_2] : memref<128x128xbf16, #tpu.memory_space<vmem>>, vector<128x128xbf16>
    %c0_3 = arith.constant 0 : index
    %c0_4 = arith.constant 0 : index
    %c0_5 = arith.constant 0 : index
    %2 = vector.load %arg2[%c0_3, %c0_4, %c0_5] : memref<3x128x128xbf16, #tpu.memory_space<vmem>>, vector<1x128x128xbf16>
    %3 = vector.shape_cast %2 : vector<1x128x128xbf16> to vector<128x128xbf16>
    %cst = arith.constant dense<0.000000e+00> : vector<128x128xf32>
    %4 = tpu.matmul %1, %3, %cst {dimension_numbers = #tpu.dot_dimension_numbers<[1], [0], [0], [1], [0, 0, 1, 1], [], []>} : vector<128x128xbf16>, vector<128x128xbf16>, vector<128x128xf32> -> vector<128x128xf32>
    %5 = vector.extract_strided_slice %0 {offsets = [0, 0], sizes = [1, 128], strides = [1, 1]} : vector<3x128xf32> to vector<1x128xf32>
    %6 = vector.broadcast %5 : vector<1x128xf32> to vector<128x128xf32>
    %7 = arith.addf %4, %6 : vector<128x128xf32>
    %cst_6 = arith.constant 0.000000e+00 : f32
    %8 = vector.broadcast %cst_6 : f32 to vector<128x128xf32>
    %9 = arith.maximumf %7, %8 : vector<128x128xf32>
    %10 = arith.truncf %9 : vector<128x128xf32> to vector<128x128xbf16>
    %c1 = arith.constant 1 : index
    %c0_7 = arith.constant 0 : index
    %c0_8 = arith.constant 0 : index
    %11 = vector.load %arg2[%c1, %c0_7, %c0_8] : memref<3x128x128xbf16, #tpu.memory_space<vmem>>, vector<1x128x128xbf16>
    %12 = vector.shape_cast %11 : vector<1x128x128xbf16> to vector<128x128xbf16>
    %cst_9 = arith.constant dense<0.000000e+00> : vector<128x128xf32>
    %13 = tpu.matmul %10, %12, %cst_9 {dimension_numbers = #tpu.dot_dimension_numbers<[1], [0], [0], [1], [0, 0, 1, 1], [], []>} : vector<128x128xbf16>, vector<128x128xbf16>, vector<128x128xf32> -> vector<128x128xf32>
    %14 = vector.extract_strided_slice %0 {offsets = [1, 0], sizes = [1, 128], strides = [1, 1]} : vector<3x128xf32> to vector<1x128xf32>
    %15 = vector.broadcast %14 : vector<1x128xf32> to vector<128x128xf32>
    %16 = arith.addf %13, %15 : vector<128x128xf32>
    %cst_10 = arith.constant 0.000000e+00 : f32
    %17 = vector.broadcast %cst_10 : f32 to vector<128x128xf32>
    %18 = arith.maximumf %16, %17 : vector<128x128xf32>
    %19 = arith.truncf %18 : vector<128x128xf32> to vector<128x128xbf16>
    %c2 = arith.constant 2 : index
    %c0_11 = arith.constant 0 : index
    %c0_12 = arith.constant 0 : index
    %20 = vector.load %arg2[%c2, %c0_11, %c0_12] : memref<3x128x128xbf16, #tpu.memory_space<vmem>>, vector<1x128x128xbf16>
    %21 = vector.shape_cast %20 : vector<1x128x128xbf16> to vector<128x128xbf16>
    %cst_13 = arith.constant dense<0.000000e+00> : vector<128x128xf32>
    %22 = tpu.matmul %19, %21, %cst_13 {dimension_numbers = #tpu.dot_dimension_numbers<[1], [0], [0], [1], [0, 0, 1, 1], [], []>} : vector<128x128xbf16>, vector<128x128xbf16>, vector<128x128xf32> -> vector<128x128xf32>
    %23 = vector.extract_strided_slice %0 {offsets = [2, 0], sizes = [1, 128], strides = [1, 1]} : vector<3x128xf32> to vector<1x128xf32>
    %24 = vector.broadcast %23 : vector<1x128xf32> to vector<128x128xf32>
    %25 = arith.addf %22, %24 : vector<128x128xf32>
    %26 = vector.extract_strided_slice %25 {offsets = [0, 0], sizes = [128, 4], strides = [1, 1]} : vector<128x128xf32> to vector<128x4xf32>
    %27 = vector.extract_strided_slice %25 {offsets = [0, 4], sizes = [128, 1], strides = [1, 1]} : vector<128x128xf32> to vector<128x1xf32>
    %cst_14 = arith.constant dense<0.000000e+00> : vector<128xf32>
    %28 = vector.multi_reduction <add>, %26, %cst_14 [1] : vector<128x4xf32> to vector<128xf32>
    %29 = vector.shape_cast %28 : vector<128xf32> to vector<128x1xf32>
    %cst_15 = arith.constant 2.500000e-01 : f32
    %30 = vector.broadcast %cst_15 : f32 to vector<128x1xf32>
    %31 = arith.mulf %29, %30 : vector<128x1xf32>
    %32 = vector.broadcast %27 : vector<128x1xf32> to vector<128x128xf32>
    %33 = arith.addf %32, %25 : vector<128x128xf32>
    %34 = vector.broadcast %31 : vector<128x1xf32> to vector<128x128xf32>
    %35 = arith.subf %33, %34 : vector<128x128xf32>
    %c0_16 = arith.constant 0 : index
    %c0_17 = arith.constant 0 : index
    %36 = vector.load %arg4[%c0_16, %c0_17] : memref<128x128xf32, #tpu.memory_space<vmem>>, vector<128x128xf32>
    tpu.vector_store %arg4[%c0_16, %c0_17], %35 {strides = array<i32>} : memref<128x128xf32, #tpu.memory_space<vmem>>, vector<128x128xf32>,
    return
  }
  func.func @transform_0(%arg0: i32) -> (i32, i32) {
    %c0_i32 = arith.constant 0 : i32
    %c0_i32_0 = arith.constant 0 : i32
    return %arg0, %c0_i32 : i32, i32
  }
  func.func @transform_1(%arg0: i32) -> (i32, i32, i32) {
    %c0_i32 = arith.constant 0 : i32
    %c0_i32_0 = arith.constant 0 : i32
    %c0_i32_1 = arith.constant 0 : i32
    %c0_i32_2 = arith.constant 0 : i32
    return %c0_i32, %c0_i32_0, %c0_i32_1 : i32, i32, i32
  }
  func.func @transform_2(%arg0: i32) -> (i32, i32) {
    %c0_i32 = arith.constant 0 : i32
    %c0_i32_0 = arith.constant 0 : i32
    %c0_i32_1 = arith.constant 0 : i32
    return %c0_i32, %c0_i32_0 : i32, i32
  }
  func.func @transform_3(%arg0: i32) -> (i32, i32) {
    %c0_i32 = arith.constant 0 : i32
    %c0_i32_0 = arith.constant 0 : i32
    return %arg0, %c0_i32 : i32, i32
  }
}

</mosaic_0001>

<bundles_post_ra>
// kernel: tpu_custom_call.1
= control target key start
LH: loop header
LB: loop body
LE: loop exit
PB: predicated region body
PF: predicated region fallthrough
CT: control target
= control target key end

     0   :  { %8 = vsyncpa [#allocation3], 0  ;;  %s1954_s0 = inlined_call_operand.hbm [shape: bf16[256,128], index: 0, kind: input, shape index: {}]   ;;  %s1955_s1 = inlined_call_operand.hbm [shape: bf16[3,128,128], index: 1, kind: input, shape index: {}]   ;;  %s1956_s2 = inlined_call_operand.vmem [shape: f32[3,128], index: 2, kind: input, shape index: {}]   ;;  %s1957_s3 = inlined_call_operand.hbm [shape: f32[256,128], index: 3, kind: output, shape index: {}]  }
   0x1   :  { %10 = vsyncpa [#allocation3 + $0x1], 0 }
   0x2   :  { %11 = vsyncpa [#allocation6], 0 }
   0x3   :  { %12 = vsyncpa [#allocation4], 0 }
   0x4   :  { %14 = vsyncpa [#allocation4 + $0x1], 0  ;;  %s1571_s12 = smov 0   ;;  %s1573_s13 = smov 0  }
   0x5   :  { %s1575_s14 = smov 0   ;;  %s1577_s15 = smov 0  }
   0x6 LB: > { %s1592_s16 = sadd.s32 4294967295, %s1541_s15   ;;  %s1107_s17 = sadd.s32 4294967294, %s1541_s15   ;;  %s1541_s15 = sphi %s1577_s15, %s1977_s15   ;;  %s1537_s14 = sphi %s1575_s14, %s1976_s14   ;;  %s1533_s13 = sphi %s1573_s13, %s1975_s13   ;;  %s1529_s12 = sphi %s1571_s12, %s1974_s12  }
   0x7   : > { %p40_p0 = scmp.ne.s32.totalorder %s1533_s13, %s1529_s12  ;;  %p1958_p1 = scmp.eq.s32.totalorder %s1592_s16, 0 }
   0x8   : > { %p112_p3 = scmp.eq.s32.totalorder %s1107_s17, 1  ;;  %p1108_p5 = scmp.ge.s32.totalorder %s1541_s15, 1 }
   0x9   : > { %p1601_p4 = por %p1958_p1, %p40_p0  ;;  %p119_p7 = scmp.lt.s32.totalorder %s1541_s15, 3 }
   0xa   : > { %p1606_p6 = por %p112_p3, %p40_p0  ;;  %s1543_s21 = smov [#allocation5]  }
   0xb   : > { %s1961_s18 = scalar_select %p1601_p4, 1, 0 }
   0xc   : > { %s1962_s19 = scalar_select %p1606_p6, 1, 0 }
   0xd   : > { %p1611_p8 = pnand %p1108_p5, %p119_p7  ;;  %s131_s22 = sshll.u32 %s1543_s21, 4  ;;  %s1615_s22 = int_to_ptr.vmem [resolvable:$true] %s131_s22 }
   0xe   : > { %s1627_s24 = sadd.s32 1, %s1541_s15   ;;  %s27_s25 = sadd.s32 1, %s1537_s14 }
   0xf   : > { %s1963_s20 = scalar_select %p1611_p8, 1, 0 }
  0x10   : > { %p1325_p9 = pneg %p1611_p8  ;;  %s24_s26 = ssub.s32 %s1541_s15, %s1627_s24 }
  0x11   : > { %s1413_s29 = scalar_lea.hbm %s1955_s1, 3072 }
  0x12   : > { %p1622_p11 = pnand %p1325_p9, %p1958_p1  ;;  %p1414_p12 = scmp.ne.s32.totalorder %s1955_s1, %s1413_s29 }
  0x13   : > { %p1420_p5 = scmp.lt.u32.totalorder %s1413_s29, %s1955_s1 }
  0x14   : > { %p1415_p13 = pneg %p1622_p11 }
  0x16   : > { %p1416_p0 = pnand %p1415_p13, %p1414_p12 }
  0x18   : > { %p1417_p3 = pneg %p1416_p0 }
  0x1a   : > { %p1422_p7 = pnand %p1420_p5, %p1417_p3 }
  0x1c   : > { %1425 = shalt.err (!%p1422_p7)
}
  0x1d   : > { %s1426_s7 = scalar_lea.vmem %s1615_s22, 3072  ;;  %p1434_p2 = scmp.lt.s32.totalorder %s1615_s22, %s1615_s22 }
  0x1e   : > { %p1427_p9 = scmp.ne.s32.totalorder %s1615_s22, %s1426_s7  ;;  %p1435_p6 = scmp.lt.s32.totalorder %s1426_s7, %s1426_s7 }
  0x20   : > { %p1429_p10 = pnand %p1427_p9, %p1415_p13  ;;  %p1436_p4 = por %p1435_p6, %p1434_p2 }
  0x22   : > { %p1430_p1 = pneg %p1429_p10 }
  0x24   : > { %p1437_p8 = pnand %p1436_p4, %p1430_p1 }
  0x26   : > { %1440 = shalt.err (!%p1437_p8)
}
  0x27   : > { %s1544_s8 = smov 64   ;;  %s1545_s9 = smov 4  }
  0x28   : > { %1328 = dma.hbm_to_vmem [thread:$0]  (!%p1622_p11), %s1955_s1, 3072, %s1615_s22, [#allocation6], %s1544_s8, %s1544_s8, %s1545_s9  }
  0x29   : > { %p25_p1 = scmp.eq.s32.totalorder %s24_s26, 0  ;;  %p34_p2 = scmp.ne.s32.totalorder %s1537_s14, %s1533_s13 }
  0x2a   : > { %p35_p4 = scmp.eq.s32.totalorder %s1541_s15, 0  ;;  %p1338_p6 = scmp.lt.s32.totalorder %s1541_s15, 2 }
  0x2b   : > { %s1661_s17 = scalar_select %p25_p1, %s1537_s14, %s27_s25  }
  0x2c   : > { %p36_p8 = por %p35_p4, %p34_p2  ;;  %p1965_p10 = scmp.eq.s32.totalorder %s1592_s16, 1 }
  0x2d   : > { %s148_s23 = sand.u32 1, %s1537_s14   ;;  %s1155_s27 = sshll.u32 %s1541_s15, 10 }
  0x2e   : > { %p1665_p12 = por %p1965_p10, %p34_p2  ;;  %s1111_s28 = sshll.u32 %s148_s23, 6 }
  0x2f   : > { %s1674_s4 = scalar_lea.hbm %s1954_s0, %s1155_s27  ;;  %s152_s22 = scalar_lea.vmem [#allocation2], %s1111_s28 }
  0x30   : > { %s159_s25 = sshll.u32 %s152_s22, 4  ;;  %p1676_p11 = pnand %p1338_p6, %p36_p8  ;;  %s1680_s25 = int_to_ptr.vmem [resolvable:$true] %s159_s25 }
  0x31   : > { %s1682_s5 = scalar_lea.sflag [#allocation3], %s148_s23  ;;  %s1441_s6 = scalar_lea.hbm %s1674_s4, 1024 }
  0x32   : > { %p1442_p13 = scmp.ne.s32.totalorder %s1674_s4, %s1441_s6  ;;  %p1443_p0 = pneg %p1676_p11 }
  0x33   : > { %s1446_s11 = scalar_lea.hbm %s1954_s0, 2048  ;;  %p1447_p7 = scmp.lt.u32.totalorder %s1674_s4, %s1954_s0 }
  0x34   : > { %p1444_p3 = pnand %p1443_p0, %p1442_p13  ;;  %p1448_p9 = scmp.lt.u32.totalorder %s1446_s11, %s1441_s6 }
  0x35   : > { %p1450_p2 = scmp.lt.u32.totalorder %s1441_s6, %s1674_s4 }
  0x36   : > { %p1445_p5 = pneg %p1444_p3  ;;  %p1449_p1 = por %p1448_p9, %p1447_p7 }
  0x38   : > { %p1451_p4 = por %p1450_p2, %p1449_p1 }
  0x3a   : > { %p1452_p6 = pnand %p1451_p4, %p1445_p5 }
  0x3c   : > { %1455 = shalt.err (!%p1452_p6)
}
  0x3d   : > { %s1456_s23 = scalar_lea.vmem %s1680_s25, 1024  ;;  %s1546_s29 = smov [#allocation2]  }
  0x3e   : > { %p1457_p8 = scmp.ne.s32.totalorder %s1680_s25, %s1456_s23  ;;  %s1461_s30 = sshll.u32 %s1546_s29, 4  ;;  %s1462_s30 = int_to_ptr.vmem [resolvable:$false] %s1461_s30 }
  0x3f   : > { %s1463_s22 = scalar_lea.vmem %s1462_s30, 2048  ;;  %p1464_p3 = scmp.lt.s32.totalorder %s1680_s25, %s1462_s30 }
  0x40   : > { %p1459_p10 = pnand %p1457_p8, %p1443_p0  ;;  %p1465_p7 = scmp.lt.s32.totalorder %s1463_s22, %s1456_s23 }
  0x42   : > { %p1460_p13 = pneg %p1459_p10  ;;  %p1466_p9 = por %p1465_p7, %p1464_p3 }
  0x44   : > { %p1467_p1 = pnand %p1466_p9, %p1460_p13 }
  0x46   : > { %1470 = shalt.err (!%p1467_p1)
}
  0x47   : > { %1332 = dma.hbm_to_vmem [thread:$0]  (!%p1676_p11), %s1674_s4, 1024, %s1680_s25, %s1682_s5, %s1544_s8, %s1544_s8, %s1545_s9  }
  0x48   : > { %p1968_p0 = scmp.ne.s32.totalorder %s1963_s20, 0 }
  0x49   : > { %s1716_s6 = sand.u32 (!%p1968_p0), 1, %s1533_s13   ;;  %p1969_p5 = scmp.ne.s32.totalorder (!%p1968_p0), %s1961_s18, 0 }
  0x4a   : > { %171 = sbr.rel (%p1968_p0) target bundleno = 1266 (0x4f2), region = 32  ;;  %s1115_s7 = sshll.u32 (!%p1968_p0), %s1716_s6, 6 }
  0x4b   : > { %s174_s10 = scalar_lea.sflag (!%p1968_p0), [#allocation3], %s1716_s6  ;;  %s1720_s11 = scalar_lea.vmem (!%p1968_p0), [#allocation2], %s1115_s7 }
  0x51   : > { %1516 = dma.done.wait (%p1969_p5), %s174_s10, 1024  }
  0x52   : > { %1518 = vsyncadd (%p1969_p5), %s174_s10, 4294966272  ;;  %p1970_p11 = scmp.eq.s32.totalorder %s1592_s16, 0 }
  0x54   : > { %1520 = dma.done.wait (%p1970_p11), [#allocation6], 3072   ;;  %p1971_p2 = pmov %p1970_p11 }
  0x55   : > { %v1381_v0 = vld [vmem:[#allocation5] sm:$0xff]   ;;  %v1382_v1 = vld [vmem:[#allocation5 + $0x8] sm:$0xff]   ;;  %v1383_v2 = vld [vmem:[#allocation5 + $0x10] sm:$0xff]   ;;  %v240_v30 = vlaneseq  ;;  %vm817_vm0 = vcmask 31744   ;;  %s1117_s8 = sshll.u32 %s1716_s6, 7  ;;  %s1156_s4 = sshll.u32 %s1592_s16, 11 }
  0x56   : > { %1522 = vsyncadd (%p1971_p2), [#allocation6], 4294964224  ;;  %1205 = vmatprep.subr.bf16.mxu0 %v1381_v0  ;;  %v1384_v3 = vld [vmem:[#allocation5 + $0x18] sm:$0xff]   ;;  %v1389_v4 = vld [vmem:[%s1720_s11] sm:$0xff]   ;;  %s1858_s9 = scalar_lea.vmem [#allocation7], %s1117_s8  ;;  %s1907_s27 = scalar_lea.hbm %s1957_s3, %s1156_s4 }
  0x57   : > { %1206 = vmatpush3.bf16.msra.mxu0 %v1381_v0  ;;  %1221 = vmatprep.mubr.bf16.mxu0 %v1389_v4  ;;  %v1385_v5 = vld [vmem:[#allocation5 + $0x20] sm:$0xff]   ;;  %v1386_v6 = vld [vmem:[#allocation5 + $0x28] sm:$0xff]   ;;  %v1387_v9 = vld [vmem:[#allocation5 + $0x30] sm:$0xff]   ;;  %v1754_v31 = vshrl.u32 %v240_v30, 7  ;;  %s1024_s25 = sshll.u32 %s1858_s9, 4  ;;  %s1011_s28 = scalar_lea.sflag [#allocation4], %s1716_s6  ;;  %s1909_s25 = int_to_ptr.vmem [resolvable:$true] %s1024_s25 }
  0x58   : > { %1207 = vmatprep.subr.bf16.mxu0 %v1382_v1  ;;  %v1397_v7 = vld [vmem:[#allocation5 + $0x40] sm:$0xff]   ;;  %v1398_v8 = vld [vmem:[#allocation5 + $0x48] sm:$0xff]   ;;  %v1399_v10 = vld [vmem:[#allocation5 + $0x50] sm:$0xff]   ;;  %s1471_s16 = scalar_lea.vmem %s1909_s25, 2048  ;;  %s1548_s23 = smov [#allocation7]  }
  0x59   : > { %1237 = vmatprep.subr.bf16.mxu1 %v1397_v7  ;;  %v1388_v11 = vld [vmem:[#allocation5 + $0x38] sm:$0xff]   ;;  %v1401_v13 = vld [vmem:[#allocation5 + $0x60] sm:$0xff]   ;;  %v1390_v14 = vld [vmem:[%s1720_s11 + $0x8] sm:$0xff]   ;;  %v242_v32 = vsub.s32 0, %v1754_v31  ;;  %p1472_p4 = scmp.ne.s32.totalorder %s1909_s25, %s1471_s16  ;;  %s1475_s29 = sshll.u32 %s1548_s23, 4  ;;  %s1476_s29 = int_to_ptr.vmem [resolvable:$false] %s1475_s29 }
  0x5a   : > { %1238 = vmatpush3.bf16.msra.mxu1 %v1397_v7  ;;  %v1400_v12 = vld [vmem:[#allocation5 + $0x58] sm:$0xff]   ;;  %v1391_v15 = vld [vmem:[%s1720_s11 + $0x10] sm:$0xff]   ;;  %v1402_v16 = vld [vmem:[#allocation5 + $0x68] sm:$0xff]   ;;  %s1477_s30 = scalar_lea.vmem %s1476_s29, 4096  ;;  %p1478_p10 = scmp.lt.s32.totalorder %s1909_s25, %s1476_s29 }
  0x5b   : > { %1208 = vmatpush3.bf16.msra.mxu0 %v1382_v1  ;;  %1239 = vmatprep.subr.bf16.mxu1 %v1398_v8  ;;  %v1392_v17 = vld [vmem:[%s1720_s11 + $0x18] sm:$0xff]   ;;  %v1393_v18 = vld [vmem:[%s1720_s11 + $0x20] sm:$0xff]   ;;  %v1394_v19 = vld [vmem:[%s1720_s11 + $0x28] sm:$0xff]   ;;  %p1473_p6 = pnand %p1472_p4, %p1665_p12  ;;  %p1479_p13 = scmp.lt.s32.totalorder %s1477_s30, %s1471_s16 }
  0x5c   : > { %1209 = vmatprep.subr.bf16.mxu0 %v1383_v2  ;;  %v1395_v20 = vld [vmem:[%s1720_s11 + $0x30] sm:$0xff]   ;;  %v1396_v21 = vld [vmem:[%s1720_s11 + $0x38] sm:$0xff]   ;;  %v1405_v24 = vld [vmem:[#allocation5 + $0x80] sm:$0xff]  }
  0x5d   : > { %v1403_v22 = vld [vmem:[#allocation5 + $0x70] sm:$0xff]   ;;  %v1404_v23 = vld [vmem:[#allocation5 + $0x78] sm:$0xff]   ;;  %v1406_v25 = vld [vmem:[#allocation5 + $0x88] sm:$0xff]   ;;  %p1474_p8 = pneg %p1473_p6  ;;  %p1480_p3 = por %p1479_p13, %p1478_p10 }
  0x5e   : > { %1240 = vmatpush3.bf16.msra.mxu1 %v1398_v8  ;;  %v1738_v26 = vld [vmem:[#allocation5 + $0x90] sm:$0xff]   ;;  %v1741_v27 = vld [vmem:[#allocation5 + $0x98] sm:$0xff]   ;;  %v1745_v28 = vld [vmem:[#allocation5 + $0xa0] sm:$0xff]  }
  0x5f   : > { %1210 = vmatpush3.bf16.msra.mxu0 %v1383_v2  ;;  %1241 = vmatprep.subr.bf16.mxu1 %v1399_v10  ;;  %v1749_v29 = vld [vmem:[#allocation5 + $0xa8] sm:$0xff]   ;;  %v1760_v33 = vld [vmem:[%s1956_s2] sm:$0x7]  ;;  %v1412_v30 = vld [vmem:[#allocation5 + $0xb8] sm:$0xff]   ;;  %p1481_p7 = pnand %p1480_p3, %p1474_p8 }
  0x60   : > { %1211 = vmatprep.subr.bf16.mxu0 %v1384_v3  ;;  %v1763_v34 = vrot.slane %v1760_v33, %v242_v32 }
  0x62   : > { %1242 = vmatpush3.bf16.msra.mxu1 %v1399_v10 }
  0x63   : > { %1212 = vmatpush3.bf16.msra.mxu0 %v1384_v3  ;;  %1243 = vmatprep.subr.bf16.mxu1 %v1400_v12 }
  0x64   : > { %1213 = vmatprep.subr.bf16.mxu0 %v1385_v5 }
  0x66   : > { %1244 = vmatpush3.bf16.msra.mxu1 %v1400_v12 }
  0x67   : > { %1214 = vmatpush3.bf16.msra.mxu0 %v1385_v5  ;;  %1245 = vmatprep.subr.bf16.mxu1 %v1401_v13 }
  0x68   : > { %1215 = vmatprep.subr.bf16.mxu0 %v1386_v6 }
  0x6a   : > { %1246 = vmatpush3.bf16.msra.mxu1 %v1401_v13 }
  0x6b   : > { %1216 = vmatpush3.bf16.msra.mxu0 %v1386_v6  ;;  %1247 = vmatprep.subr.bf16.mxu1 %v1402_v16 }
  0x6c   : > { %1217 = vmatprep.subr.bf16.mxu0 %v1387_v9 }
  0x6e   : > { %1248 = vmatpush3.bf16.msra.mxu1 %v1402_v16 }
  0x6f   : > { %1218 = vmatpush3.bf16.msra.mxu0 %v1387_v9  ;;  %1249 = vmatprep.subr.bf16.mxu1 %v1403_v22 }
  0x70   : > { %1219 = vmatprep.subr.bf16.mxu0 %v1388_v11 }
  0x72   : > { %1250 = vmatpush3.bf16.msra.mxu1 %v1403_v22 }
  0x73   : > { %1220 = vmatpush3.bf16.msra.mxu0 %v1388_v11  ;;  %1251 = vmatprep.subr.bf16.mxu1 %v1404_v23 }
  0x74   : > { %1269 = vmatprep.subr.bf16.mxu0 %v1405_v24 }
  0x76   : > { %1222 = vmatmul.mubr.bf16.vlgmr.msra.gmra.mrb[0].mxu0 %v1390_v14  ;;  %1252 = vmatpush3.bf16.msra.mxu1 %v1404_v23 }
  0x77   : > { %1225 = vmatprep.mubr.bf16.mxu0 %v1391_v15  ;;  %1301 = vmatprep.subr.bf16.mxu1 %v1405_v24 }
  0x78   : > { %1270 = vmatpush3.bf16.msra.mxu0 %v1405_v24 }
  0x79   : > { %1271 = vmatprep.subr.bf16.mxu0 %v1406_v25 }
  0x7c   : > { %1272 = vmatpush3.bf16.msra.mxu0 %v1406_v25 }
  0x7d   : > { %1273 = vmatprep.subr.bf16.mxu0 %v1738_v26 }
  0x7e   : > { %1226 = vmatmul.mubr.bf16.gmra.mrb[4].mxu0 %v1392_v17 }
  0x7f   : > { %1229 = vmatprep.mubr.bf16.mxu0 %v1393_v18 }
  0x80   : > { %1274 = vmatpush3.bf16.msra.mxu0 %v1738_v26 }
  0x81   : > { %1275 = vmatprep.subr.bf16.mxu0 %v1741_v27 }
  0x84   : > { %1276 = vmatpush3.bf16.msra.mxu0 %v1741_v27 }
  0x85   : > { %1277 = vmatprep.subr.bf16.mxu0 %v1745_v28 }
  0x86   : > { %1230 = vmatmul.mubr.bf16.gmra.mrb[8].mxu0 %v1394_v19 }
  0x87   : > { %1233 = vmatprep.mubr.bf16.mxu0 %v1395_v20 }
  0x88   : > { %1278 = vmatpush3.bf16.msra.mxu0 %v1745_v28 }
  0x89   : > { %1279 = vmatprep.subr.bf16.mxu0 %v1749_v29 }
  0x8c   : > { %1280 = vmatpush3.bf16.msra.mxu0 %v1749_v29 }
  0x8e   : > { %1234 = vmatmul.mubr.bf16.gmra.mrb[12].mxu0 %v1396_v21 }
 0x149   : > { %v1223_v35 = vpop.f32.mrb[0].mxu0 }
 0x14a   : > { %v383_v36 = vadd.f32 %v1223_v35, %v1763_v34  ;;  %v374_v37 = vpop.f32.mrb[1].mxu0 }
 0x14b   : > { %v375_v38 = vadd.f32 %v374_v37, %v1763_v34  ;;  %v1224_v39 = vpop.f32.mrb[2].mxu0 }
 0x14c   : > { %v386_v40 = vadd.f32 %v1224_v39, %v1763_v34  ;;  %v377_v41 = vpop.f32.mrb[3].mxu0  ;;  %v439_v43 = vmax.f32 %v383_v36, 0.0 }
 0x14d   : > { %v378_v42 = vadd.f32 %v377_v41, %v1763_v34  ;;  %v437_v45 = vmax.f32 %v375_v38, 0.0 }
 0x14e   : > { %v440_v44 = vmax.f32 %v386_v40, 0.0 }
 0x14f   : > { %v438_v46 = vmax.f32 %v378_v42, 0.0 }
 0x150   : > { %v454_v47 = vpack.c.bf16 %v440_v44, %v439_v43 }
 0x151   : > { %v453_v48 = vpack.c.bf16 %v438_v46, %v437_v45  ;;  %v1227_v49 = vpop.f32.mrb[4].mxu0 }
 0x152   : > { %v399_v50 = vadd.f32 %v1227_v49, %v1763_v34  ;;  %v390_v51 = vpop.f32.mrb[5].mxu0 }
 0x153   : > { %1253 = vmatprep.mubr.bf16.mxu1 %v453_v48  ;;  %v391_v52 = vadd.f32 %v390_v51, %v1763_v34  ;;  %v1228_v53 = vpop.f32.mrb[6].mxu0 }
 0x154   : > { %1254 = vmatmul.mubr.bf16.vlgmr.msra.gmra.mrb[0].mxu1 %v454_v47  ;;  %v443_v54 = vmax.f32 %v399_v50, 0.0  ;;  %v402_v55 = vadd.f32 %v1228_v53, %v1763_v34  ;;  %v393_v56 = vpop.f32.mrb[7].mxu0 }
 0x155   : > { %v441_v57 = vmax.f32 %v391_v52, 0.0  ;;  %v394_v58 = vadd.f32 %v393_v56, %v1763_v34  ;;  %1309 = vmatpush3.bf16.msra.mxu1 %v1405_v24 }
 0x156   : > { %v444_v59 = vmax.f32 %v402_v55, 0.0  ;;  %1302 = vmatprep.subr.bf16.mxu1 %v1406_v25 }
 0x157   : > { %v442_v60 = vmax.f32 %v394_v58, 0.0 }
 0x158   : > { %v456_v61 = vpack.c.bf16 %v444_v59, %v443_v54 }
 0x159   : > { %v455_v62 = vpack.c.bf16 %v442_v60, %v441_v57  ;;  %v1231_v63 = vpop.f32.mrb[8].mxu0  ;;  %1310 = vmatpush3.bf16.msra.mxu1 %v1406_v25 }
 0x15a   : > { %v415_v0 = vadd.f32 %v1231_v63, %v1763_v34  ;;  %v406_v1 = vpop.f32.mrb[9].mxu0  ;;  %1303 = vmatprep.subr.bf16.mxu1 %v1738_v26 }
 0x15b   : > { %v407_v2 = vadd.f32 %v406_v1, %v1763_v34  ;;  %v1232_v3 = vpop.f32.mrb[10].mxu0  ;;  %1257 = vmatprep.mubr.bf16.mxu1 %v455_v62 }
 0x15c   : > { %v447_v4 = vmax.f32 %v415_v0, 0.0  ;;  %v418_v5 = vadd.f32 %v1232_v3, %v1763_v34  ;;  %v409_v6 = vpop.f32.mrb[11].mxu0  ;;  %1258 = vmatmul.mubr.bf16.gmra.mrb[4].mxu1 %v456_v61 }
 0x15d   : > { %v445_v7 = vmax.f32 %v407_v2, 0.0  ;;  %v410_v8 = vadd.f32 %v409_v6, %v1763_v34  ;;  %1311 = vmatpush3.bf16.msra.mxu1 %v1738_v26 }
 0x15e   : > { %v448_v9 = vmax.f32 %v418_v5, 0.0  ;;  %1304 = vmatprep.subr.bf16.mxu1 %v1741_v27 }
 0x15f   : > { %v446_v10 = vmax.f32 %v410_v8, 0.0 }
 0x160   : > { %v458_v11 = vpack.c.bf16 %v448_v9, %v447_v4 }
 0x161   : > { %v457_v12 = vpack.c.bf16 %v446_v10, %v445_v7  ;;  %v1235_v13 = vpop.f32.mrb[12].mxu0  ;;  %1312 = vmatpush3.bf16.msra.mxu1 %v1741_v27  ;;  %v1411_v27 = vld [vmem:[#allocation5 + $0xb0] sm:$0xff]  }
 0x162   : > { %v431_v14 = vadd.f32 %v1235_v13, %v1763_v34  ;;  %v422_v15 = vpop.f32.mrb[13].mxu0  ;;  %1305 = vmatprep.subr.bf16.mxu1 %v1745_v28  ;;  %1281 = vmatprep.subr.bf16.mxu0 %v1411_v27 }
 0x163   : > { %1261 = vmatprep.mubr.bf16.mxu1 %v457_v12  ;;  %v423_v16 = vadd.f32 %v422_v15, %v1763_v34  ;;  %v1236_v17 = vpop.f32.mrb[14].mxu0  ;;  %1282 = vmatpush3.bf16.msra.mxu0 %v1411_v27 }
 0x164   : > { %1262 = vmatmul.mubr.bf16.gmra.mrb[8].mxu1 %v458_v11  ;;  %v451_v18 = vmax.f32 %v431_v14, 0.0  ;;  %v434_v19 = vadd.f32 %v1236_v17, %v1763_v34  ;;  %v425_v20 = vpop.f32.mrb[15].mxu0  ;;  %1283 = vmatprep.subr.bf16.mxu0 %v1412_v30 }
 0x165   : > { %v449_v21 = vmax.f32 %v423_v16, 0.0  ;;  %v426_v22 = vadd.f32 %v425_v20, %v1763_v34  ;;  %1313 = vmatpush3.bf16.msra.mxu1 %v1745_v28  ;;  %v480_v28 = vsub.s32 1, %v1754_v31 }
 0x166   : > { %v452_v23 = vmax.f32 %v434_v19, 0.0  ;;  %1306 = vmatprep.subr.bf16.mxu1 %v1749_v29 }
 0x167   : > { %v450_v24 = vmax.f32 %v426_v22, 0.0  ;;  %1284 = vmatpush3.bf16.msra.mxu0 %v1412_v30  ;;  %v481_v32 = vrot.slane %v1760_v33, %v480_v28 }
 0x168   : > { %v460_v25 = vpack.c.bf16 %v452_v23, %v451_v18 }
 0x169   : > { %v459_v26 = vpack.c.bf16 %v450_v24, %v449_v21  ;;  %1314 = vmatpush3.bf16.msra.mxu1 %v1749_v29 }
 0x16a   : > { %1307 = vmatprep.subr.bf16.mxu1 %v1411_v27 }
 0x16b   : > { %1265 = vmatprep.mubr.bf16.mxu1 %v459_v26  ;;  %v670_v26 = vsub.s32 2, %v1754_v31 }
 0x16c   : > { %1266 = vmatmul.mubr.bf16.gmra.mrb[12].mxu1 %v460_v25  ;;  %v1547_v25 = vmov 4  }
 0x16d   : > { %1315 = vmatpush3.bf16.msra.mxu1 %v1411_v27  ;;  %1379 = vset.pattern.permute.xlu1 %v1547_v25  ;;  %v671_v27 = vrot.slane %v1760_v33, %v670_v26 }
 0x16e   : > { %1308 = vmatprep.subr.bf16.mxu1 %v1412_v30  ;;  %1380 = vset.pattern.permute.xlu0 %v1547_v25 }
 0x171   : > { %1316 = vmatpush3.bf16.msra.mxu1 %v1412_v30 }
 0x227   : > { %v1255_v34 = vpop.f32.mrb[0].mxu1 }
 0x228   : > { %v573_v35 = vadd.f32 %v1255_v34, %v481_v32  ;;  %v564_v36 = vpop.f32.mrb[1].mxu1 }
 0x229   : > { %v565_v29 = vadd.f32 %v564_v36, %v481_v32  ;;  %v1256_v37 = vpop.f32.mrb[2].mxu1 }
 0x22a   : > { %v576_v38 = vadd.f32 %v1256_v37, %v481_v32  ;;  %v567_v39 = vpop.f32.mrb[3].mxu1  ;;  %v629_v41 = vmax.f32 %v573_v35, 0.0 }
 0x22b   : > { %v568_v40 = vadd.f32 %v567_v39, %v481_v32  ;;  %v627_v43 = vmax.f32 %v565_v29, 0.0 }
 0x22c   : > { %v630_v42 = vmax.f32 %v576_v38, 0.0 }
 0x22d   : > { %v628_v44 = vmax.f32 %v568_v40, 0.0 }
 0x22e   : > { %v644_v45 = vpack.c.bf16 %v630_v42, %v629_v41 }
 0x22f   : > { %v643_v46 = vpack.c.bf16 %v628_v44, %v627_v43  ;;  %v1259_v47 = vpop.f32.mrb[4].mxu1 }
 0x230   : > { %v589_v48 = vadd.f32 %v1259_v47, %v481_v32  ;;  %v580_v49 = vpop.f32.mrb[5].mxu1 }
 0x231   : > { %1285 = vmatprep.mubr.bf16.mxu0 %v643_v46  ;;  %v581_v50 = vadd.f32 %v580_v49, %v481_v32  ;;  %v1260_v51 = vpop.f32.mrb[6].mxu1 }
 0x232   : > { %1286 = vmatmul.mubr.bf16.vlgmr.msra.gmra.mrb[16].mxu0 %v644_v45  ;;  %v633_v52 = vmax.f32 %v589_v48, 0.0  ;;  %v592_v53 = vadd.f32 %v1260_v51, %v481_v32  ;;  %v583_v54 = vpop.f32.mrb[7].mxu1 }
 0x233   : > { %v631_v55 = vmax.f32 %v581_v50, 0.0  ;;  %v584_v56 = vadd.f32 %v583_v54, %v481_v32 }
 0x234   : > { %v634_v57 = vmax.f32 %v592_v53, 0.0 }
 0x235   : > { %v632_v58 = vmax.f32 %v584_v56, 0.0 }
 0x236   : > { %v646_v59 = vpack.c.bf16 %v634_v57, %v633_v52 }
 0x237   : > { %v645_v60 = vpack.c.bf16 %v632_v58, %v631_v55  ;;  %v1263_v61 = vpop.f32.mrb[8].mxu1 }
 0x238   : > { %v605_v62 = vadd.f32 %v1263_v61, %v481_v32  ;;  %v596_v63 = vpop.f32.mrb[9].mxu1 }
 0x239   : > { %v597_v0 = vadd.f32 %v596_v63, %v481_v32  ;;  %v1264_v1 = vpop.f32.mrb[10].mxu1  ;;  %1289 = vmatprep.mubr.bf16.mxu0 %v645_v60 }
 0x23a   : > { %v637_v2 = vmax.f32 %v605_v62, 0.0  ;;  %v608_v3 = vadd.f32 %v1264_v1, %v481_v32  ;;  %v599_v4 = vpop.f32.mrb[11].mxu1  ;;  %1290 = vmatmul.mubr.bf16.gmra.mrb[20].mxu0 %v646_v59 }
 0x23b   : > { %v635_v5 = vmax.f32 %v597_v0, 0.0  ;;  %v600_v6 = vadd.f32 %v599_v4, %v481_v32 }
 0x23c   : > { %v638_v7 = vmax.f32 %v608_v3, 0.0 }
 0x23d   : > { %v636_v8 = vmax.f32 %v600_v6, 0.0 }
 0x23e   : > { %v648_v9 = vpack.c.bf16 %v638_v7, %v637_v2 }
 0x23f   : > { %v647_v10 = vpack.c.bf16 %v636_v8, %v635_v5  ;;  %v1267_v11 = vpop.f32.mrb[12].mxu1 }
 0x240   : > { %v621_v12 = vadd.f32 %v1267_v11, %v481_v32  ;;  %v612_v13 = vpop.f32.mrb[13].mxu1 }
 0x241   : > { %1293 = vmatprep.mubr.bf16.mxu1 %v647_v10  ;;  %v613_v14 = vadd.f32 %v612_v13, %v481_v32  ;;  %v1268_v15 = vpop.f32.mrb[14].mxu1 }
 0x242   : > { %1294 = vmatmul.mubr.bf16.vlgmr.msra.gmra.mrb[16].mxu1 %v648_v9  ;;  %v641_v16 = vmax.f32 %v621_v12, 0.0  ;;  %v624_v17 = vadd.f32 %v1268_v15, %v481_v32  ;;  %v615_v18 = vpop.f32.mrb[15].mxu1 }
 0x243   : > { %v639_v19 = vmax.f32 %v613_v14, 0.0  ;;  %v616_v20 = vadd.f32 %v615_v18, %v481_v32 }
 0x244   : > { %v642_v21 = vmax.f32 %v624_v17, 0.0 }
 0x245   : > { %v640_v22 = vmax.f32 %v616_v20, 0.0 }
 0x246   : > { %v650_v23 = vpack.c.bf16 %v642_v21, %v641_v16 }
 0x247   : > { %v649_v24 = vpack.c.bf16 %v640_v22, %v639_v19 }
 0x249   : > { %1297 = vmatprep.mubr.bf16.mxu1 %v649_v24 }
 0x24a   : > { %1298 = vmatmul.mubr.bf16.gmra.mrb[20].mxu1 %v650_v23 }
 0x305   : > { %v1287_v30 = vpop.f32.mrb[16].mxu0 }
 0x306   : > { %v1793_v28 = vadd.f32 %v1287_v30, %v671_v27  ;;  %v754_v34 = vpop.f32.mrb[17].mxu0 }
 0x307   : > { %v1795_v35 = vadd.f32 %v754_v34, %v671_v27  ;;  %v1288_v32 = vpop.f32.mrb[18].mxu0 }
 0x308   : > { %894 = vperm.xlu1 %1379, %v1793_v28   ;;  %v757_v36 = vpop.f32.mrb[19].mxu0  ;;  %v824_v57 = vsel %vm817_vm0, %v1793_v28, 0.0  ;;  %v766_v2 = vadd.f32 %v1288_v32, %v671_v27 }
 0x309   : > { %884 = vperm.xlu0 %1380, %v1795_v35   ;;  %v1815_v54 = vadd.f32 %v757_v36, %v671_v27  ;;  %v818_v55 = vsel %vm817_vm0, %v1795_v35, 0.0 }
 0x30a   : > { %v827_v3 = vsel %vm817_vm0, %v766_v2, 0.0 }
 0x30b   : > { %v821_v58 = vsel %vm817_vm0, %v1815_v54, 0.0 }
 0x30d   : > { %v1291_v29 = vpop.f32.mrb[20].mxu0 }
 0x30e   : > { %v770_v37 = vpop.f32.mrb[21].mxu0  ;;  %v1819_v56 = vadd.f32 %v1291_v29, %v671_v27 }
 0x30f   : > { %v1292_v38 = vpop.f32.mrb[22].mxu0  ;;  %v1825_v59 = vadd.f32 %v770_v37, %v671_v27 }
 0x310   : > { %v1799_v39 = vadd.f32 %v1292_v38, %v671_v27  ;;  %v773_v31 = vpop.f32.mrb[23].mxu0  ;;  %v836_v60 = vsel %vm817_vm0, %v1819_v56, 0.0 }
 0x311   : > { %v1801_v40 = vadd.f32 %v773_v31, %v671_v27  ;;  %v830_v62 = vsel %vm817_vm0, %v1825_v59, 0.0 }
 0x312   : > { %v839_v6 = vsel %vm817_vm0, %v1799_v39, 0.0 }
 0x313   : > { %v833_v17 = vsel %vm817_vm0, %v1801_v40, 0.0 }
 0x315   : > { %v1295_v33 = vpop.f32.mrb[16].mxu1 }
 0x316   : > { %v786_v41 = vpop.f32.mrb[17].mxu1  ;;  %v1829_v61 = vadd.f32 %v1295_v33, %v671_v27 }
 0x317   : > { %v1296_v42 = vpop.f32.mrb[18].mxu1  ;;  %v1833_v63 = vadd.f32 %v786_v41, %v671_v27 }
 0x318   : > { %v1803_v43 = vadd.f32 %v1296_v42, %v671_v27  ;;  %v789_v44 = vpop.f32.mrb[19].mxu1  ;;  %v848_v0 = vsel %vm817_vm0, %v1829_v61, 0.0 }
 0x319   : > { %v1805_v45 = vadd.f32 %v789_v44, %v671_v27  ;;  %v842_v1 = vsel %vm817_vm0, %v1833_v63, 0.0 }
 0x31a   : > { %v851_v33 = vsel %vm817_vm0, %v1803_v43, 0.0 }
 0x31b   : > { %v845_v41 = vsel %vm817_vm0, %v1805_v45, 0.0 }
 0x31d   : > { %v1299_v46 = vpop.f32.mrb[20].mxu1 }
 0x31e   : > { %v1807_v47 = vadd.f32 %v1299_v46, %v671_v27  ;;  %v802_v48 = vpop.f32.mrb[21].mxu1 }
 0x31f   : > { %v1809_v49 = vadd.f32 %v802_v48, %v671_v27  ;;  %v1300_v50 = vpop.f32.mrb[22].mxu1 }
 0x320   : > { %v1811_v51 = vadd.f32 %v1300_v50, %v671_v27  ;;  %v805_v52 = vpop.f32.mrb[23].mxu1  ;;  %v860_v4 = vsel %vm817_vm0, %v1807_v47, 0.0 }
 0x321   : > { %v1813_v53 = vadd.f32 %v805_v52, %v671_v27  ;;  %v854_v5 = vsel %vm817_vm0, %v1809_v49, 0.0 }
 0x322   : > { %v863_v52 = vsel %vm817_vm0, %v1811_v51, 0.0 }
 0x328   : > { %819 = vadd.xlane.f32.xlu0 %v818_v55 }
 0x32c   : > { %825 = vadd.xlane.f32.xlu1 %v824_v57  ;;  %822 = vadd.xlane.f32.xlu0 %v821_v58 }
 0x330   : > { %837 = vadd.xlane.f32.xlu0 %v836_v60 }
 0x334   : > { %831 = vadd.xlane.f32.xlu0 %v830_v62 }
 0x338   : > { %849 = vadd.xlane.f32.xlu0 %v848_v0 }
 0x33c   : > { %843 = vadd.xlane.f32.xlu0 %v842_v1 }
 0x33d   : > { %899 = vperm.xlu1 %1379, %v766_v2  }
 0x352   : > { %939 = vperm.xlu0 %1380, %v1803_v43  }
 0x356   : > { %929 = vperm.xlu0 %1380, %v1805_v45  }
 0x361   : > { %828 = vadd.xlane.f32.xlu1 %v827_v3 }
 0x372   : > { %889 = vperm.xlu1 %1379, %v1815_v54  }
 0x375   : > { %861 = vadd.xlane.f32.xlu0 %v860_v4 }
 0x376   : > { %914 = vperm.xlu1 %1379, %v1819_v56  }
 0x379   : > { %855 = vadd.xlane.f32.xlu0 %v854_v5 }
 0x37a   : > { %904 = vperm.xlu1 %1379, %v1825_v59  }
 0x37e   : > { %919 = vperm.xlu1 %1379, %v1799_v39  }
 0x387   : > { %v895_v8 = vpop.permute.xlu1 %894 }
 0x388   : > { %v885_v7 = vpop.permute.xlu0 %884  ;;  %v964_v14 = vadd.f32 %v895_v8, %v1793_v28 }
 0x389   : > { %v962_v10 = vadd.f32 %v885_v7, %v1795_v35 }
 0x38f   : > { %949 = vperm.xlu0 %1380, %v1813_v53  }
 0x393   : > { %959 = vperm.xlu0 %1380, %v1811_v51  }
 0x3a2   : > { %840 = vadd.xlane.f32.xlu1 %v839_v6 }
 0x3b3   : > { %909 = vperm.xlu1 %1379, %v1801_v40  }
 0x3b5   : > { %v820_v9 = vpop.xlane.xlu0 %819 }
 0x3b6   : > { %v866_v11 = vmul.f32 0.25, %v820_v9 }
 0x3b8   : > { %v978_v12 = vsub.f32 %v962_v10, %v866_v11 }
 0x3b9   : > { %v826_v13 = vpop.xlane.xlu1 %825  ;;  %v823_v19 = vpop.xlane.xlu0 %822 }
 0x3ba   : > { %994 = vst [vmem:[%s1858_s9] sm:$0xff] %v978_v12  ;;  %v868_v15 = vmul.f32 0.25, %v826_v13  ;;  %v867_v26 = vmul.f32 0.25, %v823_v19 }
 0x3bc   : > { %v980_v16 = vsub.f32 %v964_v14, %v868_v15 }
 0x3bd   : > { %v900_v18 = vpop.permute.xlu1 %899  ;;  %v838_v24 = vpop.xlane.xlu0 %837 }
 0x3be   : > { %996 = vst [vmem:[%s1858_s9 + $0x10] sm:$0xff] %v980_v16  ;;  %v965_v21 = vadd.f32 %v900_v18, %v766_v2  ;;  %v872_v30 = vmul.f32 0.25, %v838_v24 }
 0x3c1   : > { %v832_v32 = vpop.xlane.xlu0 %831 }
 0x3c2   : > { %v870_v36 = vmul.f32 0.25, %v832_v32 }
 0x3d7   : > { %834 = vadd.xlane.f32.xlu1 %v833_v17 }
 0x3e8   : > { %934 = vperm.xlu1 %1379, %v1829_v61  }
 0x3ec   : > { %924 = vperm.xlu1 %1379, %v1833_v63  }
 0x3ee   : > { %v829_v20 = vpop.xlane.xlu1 %828 }
 0x3ef   : > { %v869_v22 = vmul.f32 0.25, %v829_v20 }
 0x3f1   : > { %v981_v23 = vsub.f32 %v965_v21, %v869_v22 }
 0x3f2   : > { %v890_v25 = vpop.permute.xlu1 %889 }
 0x3f3   : > { %997 = vst [vmem:[%s1858_s9 + $0x18] sm:$0xff] %v981_v23  ;;  %v963_v27 = vadd.f32 %v890_v25, %v1815_v54  ;;  %v857_v54 = vsel %vm817_vm0, %v1813_v53, 0.0 }
 0x3f5   : > { %v979_v28 = vsub.f32 %v963_v27, %v867_v26 }
 0x3f6   : > { %v915_v34 = vpop.permute.xlu1 %914 }
 0x3f7   : > { %995 = vst [vmem:[%s1858_s9 + $0x8] sm:$0xff] %v979_v28  ;;  %v968_v35 = vadd.f32 %v915_v34, %v1819_v56  ;;  %v850_v56 = vpop.xlane.xlu0 %849 }
 0x3f9   : > { %v984_v29 = vsub.f32 %v968_v35, %v872_v30 }
 0x3fa   : > { %v905_v37 = vpop.permute.xlu1 %904 }
 0x3fb   : > { %1000 = vst [vmem:[%s1858_s9 + $0x30] sm:$0xff] %v984_v29  ;;  %v966_v38 = vadd.f32 %v905_v37, %v1825_v59  ;;  %v876_v59 = vmul.f32 0.25, %v850_v56  ;;  %v844_v1 = vpop.xlane.xlu0 %843 }
 0x3fc   : > { %v874_v2 = vmul.f32 0.25, %v844_v1 }
 0x3fd   : > { %v982_v31 = vsub.f32 %v966_v38, %v870_v36 }
 0x3fe   : > { %v920_v42 = vpop.permute.xlu1 %919 }
 0x3ff   : > { %998 = vst [vmem:[%s1858_s9 + $0x20] sm:$0xff] %v982_v31  ;;  %v969_v46 = vadd.f32 %v920_v42, %v1799_v39  ;;  %v940_v7 = vpop.permute.xlu0 %939 }
 0x400   : > { %v973_v10 = vadd.f32 %v940_v7, %v1803_v43 }
 0x410   : > { %852 = vadd.xlane.f32.xlu1 %v851_v33 }
 0x414   : > { %846 = vadd.xlane.f32.xlu1 %v845_v41 }
 0x425   : > { %944 = vperm.xlu1 %1379, %v1809_v49  }
 0x42f   : > { %v841_v44 = vpop.xlane.xlu1 %840 }
 0x430   : > { %v873_v48 = vmul.f32 0.25, %v841_v44 }
 0x432   : > { %v985_v50 = vsub.f32 %v969_v46, %v873_v48 }
 0x433   : > { %v910_v55 = vpop.permute.xlu1 %909 }
 0x434   : > { %1001 = vst [vmem:[%s1858_s9 + $0x38] sm:$0xff] %v985_v50  ;;  %v967_v39 = vadd.f32 %v910_v55, %v1801_v40  ;;  %v930_v40 = vpop.permute.xlu0 %929 }
 0x435   : > { %v971_v13 = vadd.f32 %v930_v40, %v1805_v45 }
 0x438   : > { %v862_v8 = vpop.xlane.xlu0 %861 }
 0x439   : > { %v880_v30 = vmul.f32 0.25, %v862_v8 }
 0x43c   : > { %v856_v15 = vpop.xlane.xlu0 %855 }
 0x440   : > { %v950_v43 = vpop.permute.xlu0 %949 }
 0x441   : > { %v975_v25 = vadd.f32 %v950_v43, %v1813_v53 }
 0x444   : > { %v960_v20 = vpop.permute.xlu0 %959 }
 0x445   : > { %v977_v45 = vadd.f32 %v960_v20, %v1811_v51 }
 0x449   : > { %864 = vadd.xlane.f32.xlu1 %v863_v52 }
 0x44d   : > { %858 = vadd.xlane.f32.xlu1 %v857_v54 }
 0x45e   : > { %954 = vperm.xlu1 %1379, %v1807_v47  }
 0x464   : > { %v835_v57 = vpop.xlane.xlu1 %834 }
 0x465   : > { %v871_v58 = vmul.f32 0.25, %v835_v57 }
 0x467   : > { %v983_v60 = vsub.f32 %v967_v39, %v871_v58 }
 0x468   : > { %v935_v62 = vpop.permute.xlu1 %934 }
 0x469   : > { %999 = vst [vmem:[%s1858_s9 + $0x28] sm:$0xff] %v983_v60  ;;  %v972_v0 = vadd.f32 %v935_v62, %v1829_v61 }
 0x46b   : > { %v988_v3 = vsub.f32 %v972_v0, %v876_v59 }
 0x46c   : > { %v925_v4 = vpop.permute.xlu1 %924 }
 0x46d   : > { %1004 = vst [vmem:[%s1858_s9 + $0x50] sm:$0xff] %v988_v3  ;;  %v970_v5 = vadd.f32 %v925_v4, %v1833_v63  ;;  %v878_v63 = vmul.f32 0.25, %v856_v15 }
 0x46f   : > { %v986_v6 = vsub.f32 %v970_v5, %v874_v2 }
 0x471   : > { %1002 = vst [vmem:[%s1858_s9 + $0x40] sm:$0xff] %v986_v6 }
 0x49d   : > { %v853_v9 = vpop.xlane.xlu1 %852 }
 0x49e   : > { %v877_v11 = vmul.f32 0.25, %v853_v9 }
 0x4a0   : > { %v989_v61 = vsub.f32 %v973_v10, %v877_v11 }
 0x4a1   : > { %v847_v12 = vpop.xlane.xlu1 %846 }
 0x4a2   : > { %1005 = vst [vmem:[%s1858_s9 + $0x58] sm:$0xff] %v989_v61  ;;  %v875_v14 = vmul.f32 0.25, %v847_v12 }
 0x4a4   : > { %v987_v16 = vsub.f32 %v971_v13, %v875_v14 }
 0x4a5   : > { %v945_v17 = vpop.permute.xlu1 %944 }
 0x4a6   : > { %1003 = vst [vmem:[%s1858_s9 + $0x48] sm:$0xff] %v987_v16  ;;  %v974_v18 = vadd.f32 %v945_v17, %v1809_v49 }
 0x4a8   : > { %v990_v19 = vsub.f32 %v974_v18, %v878_v63 }
 0x4aa   : > { %1006 = vst [vmem:[%s1858_s9 + $0x60] sm:$0xff] %v990_v19 }
 0x4d6   : > { %v865_v21 = vpop.xlane.xlu1 %864 }
 0x4d7   : > { %v881_v22 = vmul.f32 0.25, %v865_v21 }
 0x4d9   : > { %v993_v23 = vsub.f32 %v977_v45, %v881_v22 }
 0x4da   : > { %v859_v24 = vpop.xlane.xlu1 %858 }
 0x4db   : > { %1009 = vst [vmem:[%s1858_s9 + $0x78] sm:$0xff] %v993_v23  ;;  %v879_v26 = vmul.f32 0.25, %v859_v24 }
 0x4dd   : > { %v991_v27 = vsub.f32 %v975_v25, %v879_v26 }
 0x4de   : > { %v955_v49 = vpop.permute.xlu1 %954 }
 0x4df   : > { %1007 = vst [vmem:[%s1858_s9 + $0x68] sm:$0xff] %v991_v27  ;;  %v976_v28 = vadd.f32 %v955_v49, %v1807_v47 }
 0x4e1   : > { %v992_v51 = vsub.f32 %v976_v28, %v880_v30 }
 0x4e3   : > { %1008 = vst [vmem:[%s1858_s9 + $0x70] sm:$0xff] %v992_v51 }
 0x4e4   : > { %1484 = shalt.err (!%p1481_p7)
}
 0x4e5   : > { %s1485_s22 = scalar_lea.hbm %s1907_s27, 2048  ;;  %s1489_s11 = scalar_lea.hbm %s1957_s3, 4096 }
 0x4e6   : > { %p1486_p9 = scmp.ne.s32.totalorder %s1907_s27, %s1485_s22  ;;  %p1490_p5 = scmp.lt.u32.totalorder %s1907_s27, %s1957_s3 }
 0x4e7   : > { %p1491_p11 = scmp.lt.u32.totalorder %s1489_s11, %s1485_s22  ;;  %p1493_p4 = scmp.lt.u32.totalorder %s1485_s22, %s1907_s27 }
 0x4e8   : > { %p1487_p1 = pnand %p1486_p9, %p1665_p12 }
 0x4e9   : > { %p1492_p2 = por %p1491_p11, %p1490_p5 }
 0x4ea   : > { %p1488_p0 = pneg %p1487_p1 }
 0x4eb   : > { %p1494_p6 = por %p1493_p4, %p1492_p2 }
 0x4ed   : > { %p1495_p8 = pnand %p1494_p6, %p1488_p0 }
 0x4ef   : > { %1498 = shalt.err (!%p1495_p8)
}
 0x4f0   : > { %s1549_s8 = smov 128   ;;  %s1550_s9 = smov 8  }
 0x4f1   : > { %1323 = dma.vmem_to_hbm [thread:$0]  (%p1665_p12), %s1909_s25, 2048, %s1907_s27, %s1011_s28, %s1549_s8, %s1549_s8, %s1550_s9  }
 0x4f2 PF: > { %s1039_s4 = sand.u32 1, %s1529_s12   ;;  %p1972_p10 = scmp.ne.s32.totalorder %s1962_s19, 0 }
 0x4f3   : > { %p1973_p13 = scmp.ge.s32.totalorder %s1541_s15, 2  ;;  %s1040_s26 = scalar_lea.sflag [#allocation4], %s1039_s4 }
 0x4f5   : > { %p1334_p3 = pnand %p1973_p13, %p1972_p10 }
 0x4f7   : > { %1524 = dma.done.wait (!%p1334_p3), %s1040_s26, 2048  }
 0x4f8   : > { %1526 = vsyncadd (!%p1334_p3), %s1040_s26, 4294965248  ;;  %p17_p7 = scmp.ge.s32.totalorder %s1627_s24, 4   ;;  %s1974_s12 = smov %s1533_s13 }
 0x4f9   : > { %s1975_s13 = smov %s1537_s14  ;;  %s1976_s14 = smov %s1661_s17 }
 0x4fa   : > { %s1977_s15 = smov %s1627_s24  ;;  %19 = sbr.rel (!%p17_p7) target bundleno = 6 (0x6), region = 83 }
 0x501   :  { %1045 = vsyncpa [#allocation3], 1 }
 0x502   :  { %1047 = vsyncpa [#allocation3 + $0x1], 1 }
 0x503   :  { %1048 = vsyncpa [#allocation6], 1 }
 0x504   :  { %1049 = vsyncpa [#allocation4], 1 }
 0x505   :  { %1051 = vsyncpa [#allocation4 + $0x1], 1 }

</bundles_post_ra>
